<compile_context>
chip_gen: v6e
topology: v6e:2x2x1
jax: 0.10.0
libtpu: 0.0.40
codegen_flags: <defaults>
</compile_context>

<pallas_src>
import functools

import jax
import jax.numpy as jnp
from jax import lax
from jax.experimental import pallas as pl
from jax.experimental.pallas import tpu as pltpu


_MAX_ROW_BLOCK = 256  # default q-row tile (multiple of 8); auto-shrunk to fit VMEM


def _fast_recip(z):
    """1/z via EUP approx reciprocal + one Newton step (~f32 accurate, no VPU divide).

    Deliberate numerics change vs. an exact divide (documented); error ~1 ulp, well
    inside the 1e-6 / 1e-12 regularisation of the denominators it is applied to.
    """
    r = pl.reciprocal(z, approx=True)
    return r * (2.0 - z * r)


def _triplet_wrt_kernel(*refs, normalize_feature, gram_dtype, shared_x):
    """One q-row block (tq rows) against all N key rows.

    refs = (x_q, x_all, t_col, t_row, softplus_out, correct_out)   if not shared_x
         = (x_all, t_col, t_row, softplus_out, correct_out)        if shared_x
    """
    if shared_x:
        x_all_ref, t_col_ref, t_row_ref, sp_ref, cf_ref = refs
        x_q_ref = x_all_ref
    else:
        x_q_ref, x_all_ref, t_col_ref, t_row_ref, sp_ref, cf_ref = refs

    f32 = jnp.float32

    # ---- load & (optionally) round to the MXU dtype --------------------------------
    # Squared norms are computed from the *rounded* values so the pdist cancellation
    # (|xi|^2 + |xj|^2 - <xi,xj>) is consistent with the gram matmul.
    xa = x_all_ref[...]                                      # (N, D)
    ga = xa.astype(gram_dtype)
    ga32 = ga.astype(f32)
    sq_a = jnp.sum(ga32 * ga32, axis=1, keepdims=True)       # (N, 1)

    if shared_x:
        gq32, sq_q = ga32, sq_a
    else:
        xq = x_q_ref[...]                                    # (tq, D)
        gq32 = xq.astype(gram_dtype).astype(f32)
        sq_q = jnp.sum(gq32 * gq32, axis=1, keepdims=True)   # (tq, 1)

    # ---- pdist: fold the "2" (and the normalisation row-scale) into the MXU lhs ----
    if normalize_feature:
        inv_q = _fast_recip(jnp.sqrt(sq_q) + 1e-12)          # (tq, 1)
        inv_a = inv_q if shared_x else _fast_recip(jnp.sqrt(sq_a) + 1e-12)
        lhs = (gq32 * (2.0 * inv_q)).astype(gram_dtype)
        gram2 = lax.dot_general(lhs, ga, (((1,), (1,)), ((), ())),
                                preferred_element_type=f32)
        gram2 = gram2 * jnp.transpose(inv_a)                 # single remaining N^2 scale
        d2 = sq_q * (inv_q * inv_q) + jnp.transpose(sq_a * (inv_a * inv_a)) - gram2
    else:
        lhs = (gq32 * 2.0).astype(gram_dtype)                # *2 is exact; no N^2 scale left
        gram2 = lax.dot_general(lhs, ga, (((1,), (1,)), ((), ())),
                                preferred_element_type=f32)
        d2 = sq_q + jnp.transpose(sq_a) - gram2
    dist = jnp.sqrt(jnp.maximum(d2, 1e-12))                  # (tq, N)

    is_pos = t_col_ref[...] == t_row_ref[...]                # (tq,1)==(1,N) -> (tq,N)

    # ---- positive branch: softmax over dist restricted to positives ----------------
    # The exp argument is masked *before* exp, so every intermediate stays finite.
    dp = jnp.where(is_pos, dist, 0.0)
    max_p = jnp.max(dp, axis=1, keepdims=True)
    e_p = jnp.where(is_pos, jnp.exp(dp - max_p), 0.0)
    furthest_positive = (jnp.sum(dist * e_p, axis=1, keepdims=True) *
                         _fast_recip(jnp.sum(e_p, axis=1, keepdims=True) + 1e-06))

    # ---- negative branch ------------------------------------------------------------
    # Reference shift max_j(-dist * is_neg) is exactly 0 for every row (the diagonal is
    # always a positive and contributes 0; all negative entries are < 0), so it is
    # dropped.  exp(-dist) <= 1 keeps everything finite.
    e_n = jnp.where(is_pos, 0.0, jnp.exp(-dist))
    closest_negative = (jnp.sum(dist * e_n, axis=1, keepdims=True) *
                        _fast_recip(jnp.sum(e_n, axis=1, keepdims=True) + 1e-06))

    # ---- SoftMarginLoss(y=1) per row (stable softplus) + "correct" flag -------------
    z = closest_negative - furthest_positive                 # (tq, 1)
    sp_ref[...] = jnp.maximum(-z, 0.0) + jnp.log(1.0 + jnp.exp(-jnp.abs(z)))
    cf_ref[...] = (closest_negative >= furthest_positive).astype(jnp.int32)


def _vmem_capacity_bytes():
    try:
        cap = getattr(pltpu.get_tpu_info(), "vmem_capacity_bytes", None)
        if cap:
            return int(cap)
    except Exception:
        pass
    return 64 << 20  # conservative fallback: v7x per-TensorCore VMEM


def _vmem_estimate(n, d, tq, x_itemsize, shared_x):
    x_bytes = (n * d if shared_x else n * d + tq * d) * x_itemsize * 2  # double-buffered
    temps = 8 * tq * n * 4                                              # live (tq,N) f32 temps
    return x_bytes + temps + (2 << 20)


def triplet_loss_wrt(inputs, targets, normalize_feature=False,
                     use_bf16_gram=True, block_rows=None):
    """JAX/Pallas TPU equivalent of TripletLoss_WRT.forward -> (loss, correct).

    use_bf16_gram: run the O(N^2*D) gram matmul on the MXU in bf16 (native on
      v5e/v6e/v7x, ~3x the emulated f32 dot).  Set False for bit-faithful f32.
    block_rows: optional q-row tile override (multiple of 8); default auto.
    """
    x = jnp.asarray(inputs)                      # keep caller dtype (bf16 accepted end-to-end)
    if not jnp.issubdtype(x.dtype, jnp.floating):
        x = x.astype(jnp.float32)
    n, d = x.shape
    t = jnp.asarray(targets, jnp.int32).reshape(-1)
    assert t.shape[0] == n
    t_col = t.reshape(n, 1)
    t_row = t.reshape(1, n)

    gram_dtype = (jnp.bfloat16
                  if (use_bf16_gram or x.dtype == jnp.bfloat16) else jnp.float32)

    cap = _vmem_capacity_bytes()
    if block_rows is not None:
        tq = min(int(block_rows), n)
        if tq < n and tq % 8 != 0:
            raise ValueError("block_rows must be a multiple of 8")
    elif n <= _MAX_ROW_BLOCK:
        tq = n
    else:
        tq = _MAX_ROW_BLOCK
        while tq > 8 and _vmem_estimate(n, d, tq, x.dtype.itemsize, False) > int(cap * 0.8):
            tq //= 2

    shared_x = tq >= n
    grid = (pl.cdiv(n, tq),)
    est = _vmem_estimate(n, d, tq, x.dtype.itemsize, shared_x)
    vmem_limit = int(min(max(est, 16 << 20), int(cap * 0.85)))

    kernel = functools.partial(_triplet_wrt_kernel,
                               normalize_feature=bool(normalize_feature),
                               gram_dtype=gram_dtype,
                               shared_x=shared_x)

    x_all_spec = pl.BlockSpec((n, d), lambda i: (0, 0))       # full matrix, resident
    t_col_spec = pl.BlockSpec((tq, 1), lambda i: (i, 0))
    t_row_spec = pl.BlockSpec((1, n), lambda i: (0, 0))
    out_spec = pl.BlockSpec((tq, 1), lambda i: (i, 0))

    if shared_x:
        in_specs = [x_all_spec, t_col_spec, t_row_spec]
        operands = (x, t_col, t_row)
    else:
        x_q_spec = pl.BlockSpec((tq, d), lambda i: (i, 0))
        in_specs = [x_q_spec, x_all_spec, t_col_spec, t_row_spec]
        operands = (x, x, t_col, t_row)

    sp, cf = pl.pallas_call(
        kernel,
        out_shape=(jax.ShapeDtypeStruct((n, 1), jnp.float32),
                   jax.ShapeDtypeStruct((n, 1), jnp.int32)),
        grid=grid,
        in_specs=in_specs,
        out_specs=(out_spec, out_spec),
        compiler_params=pltpu.CompilerParams(
            dimension_semantics=("parallel",),
            vmem_limit_bytes=vmem_limit),
    )(*operands)

    loss = jnp.sum(sp) / jnp.float32(n)          # SoftMarginLoss default reduction='mean'
    correct = jnp.sum(cf)
    return loss, correct


def _triplet_loss_wrt_ref(inputs, targets, normalize_feature=False):
    """Pure-JAX f32 reference mirroring the PyTorch module (for sanity checks)."""
    x = jnp.asarray(inputs, jnp.float32)
    if normalize_feature:
        x = x / (jnp.sqrt(jnp.sum(x * x, axis=-1, keepdims=True)) + 1e-12)
    sq = jnp.sum(x * x, axis=1, keepdims=True)
    dist = jnp.sqrt(jnp.maximum(sq + sq.T - 2.0 * (x @ x.T), 1e-12))
    is_pos = (targets[:, None] == targets[None, :]).astype(jnp.float32)
    is_neg = 1.0 - is_pos
    dist_ap = dist * is_pos
    dist_an = dist * is_neg

    def soft_w(dmat, mask):
        max_v = jnp.max(dmat * mask, axis=1, keepdims=True)
        diff = dmat - max_v
        z = jnp.sum(jnp.exp(diff) * mask, axis=1, keepdims=True) + 1e-06
        return jnp.exp(diff) * mask / z

    fp = jnp.sum(dist_ap * soft_w(dist_ap, is_pos), axis=1)
    cn = jnp.sum(dist_an * soft_w(-dist_an, is_neg), axis=1)
    loss = jnp.mean(jnp.log(1.0 + jnp.exp(-(cn - fp))))
    correct = jnp.sum((cn >= fp).astype(jnp.int32))
    return loss, correct


if __name__ == "__main__":
    key = jax.random.PRNGKey(0)
    N, D = 8, 32
    inputs = jax.random.normal(key, (N, D), dtype=jnp.float32)
    targets = jnp.array([0, 0, 1, 1, 2, 2, 3, 3], dtype=jnp.int32)   # 4 ids x 2 samples

    def check(inp, tgt, norm, bf16, rtol, atol, check_correct, block_rows=None):
        loss, correct = triplet_loss_wrt(inp, tgt, normalize_feature=norm,
                                         use_bf16_gram=bf16, block_rows=block_rows)
        loss, correct = jax.block_until_ready((loss, correct))
        ref_loss, ref_correct = _triplet_loss_wrt_ref(inp, tgt, norm)
        assert jnp.allclose(loss, ref_loss, rtol=rtol, atol=atol), \
            (float(loss), float(ref_loss))
        if check_correct:
            assert int(correct) == int(ref_correct), (int(correct), int(ref_correct))

    # exact (f32) gram paths, tight tolerance
    check(inputs, targets, norm=False, bf16=False, rtol=1e-4, atol=1e-4, check_correct=True)
    check(inputs, targets, norm=True,  bf16=False, rtol=2e-4, atol=2e-4, check_correct=True)

    # bf16-MXU default path (loose tolerance; `correct` may flip on near-zero margins)
    check(inputs, targets, norm=False, bf16=True, rtol=1e-1, atol=1e-1, check_correct=False)
    check(inputs, targets, norm=True,  bf16=True, rtol=3e-2, atol=3e-2, check_correct=False)

    # ragged, non-(8,128)-aligned shapes — no wrapper-side padding of x
    inputs2 = jax.random.normal(jax.random.PRNGKey(0), (6, 40), dtype=jnp.float32)
    targets2 = jnp.array([0, 0, 1, 1, 2, 2], dtype=jnp.int32)
    check(inputs2, targets2, norm=False, bf16=False, rtol=1e-4, atol=1e-4, check_correct=True)

    # multi-block row-tiled grid: N=20, forced tq=8 -> grid=(3,), last block partial
    inputs3 = jax.random.normal(jax.random.PRNGKey(1), (20, 32), dtype=jnp.float32)
    targets3 = jnp.arange(20, dtype=jnp.int32) % 5
    check(inputs3, targets3, norm=False, bf16=False, rtol=1e-4, atol=1e-4,
          check_correct=True, block_rows=8)

    print("KERNEL_OK")
</pallas_src>

<mosaic_0001>
module attributes {stable_mosaic.version = 11 : i64} {
  func.func @_triplet_wrt_kernel(%arg0: i32, %arg1: memref<8x32xf32, #tpu.memory_space<vmem>>, %arg2: memref<8x1xi32, #tpu.memory_space<vmem>>, %arg3: memref<1x8xi32, #tpu.memory_space<vmem>>, %arg4: memref<8x1xf32, #tpu.memory_space<vmem>>, %arg5: memref<8x1xi32, #tpu.memory_space<vmem>>) attributes {dimension_semantics = [#tpu.dimension_semantics<parallel>], iteration_bounds = array<i64: 1>, scalar_prefetch = 0 : i64, scratch_operands = 0 : i64, tpu.core_type = #tpu.core_type<tc>, window_params = [{pipeline_mode = #tpu.pipeline_mode<synchronous>, transform_indices = @transform_0, window_bounds = array<i64: 8, 32>}, {transform_indices = @transform_1, window_bounds = array<i64: 8, 1>}, {pipeline_mode = #tpu.pipeline_mode<synchronous>, transform_indices = @transform_2, window_bounds = array<i64: 1, 8>}, {transform_indices = @transform_3, window_bounds = array<i64: 8, 1>}, {transform_indices = @transform_4, window_bounds = array<i64: 8, 1>}]} {
    %c0 = arith.constant 0 : index
    %c0_0 = arith.constant 0 : index
    %0 = vector.load %arg1[%c0, %c0_0] : memref<8x32xf32, #tpu.memory_space<vmem>>, vector<8x32xf32>
    %1 = arith.mulf %0, %0 : vector<8x32xf32>
    %cst = arith.constant dense<0.000000e+00> : vector<8xf32>
    %2 = vector.multi_reduction <add>, %1, %cst [1] : vector<8x32xf32> to vector<8xf32>
    %3 = vector.shape_cast %2 : vector<8xf32> to vector<8x1xf32>
    %cst_1 = arith.constant 2.000000e+00 : f32
    %4 = vector.broadcast %cst_1 : f32 to vector<8x32xf32>
    %5 = arith.mulf %0, %4 : vector<8x32xf32>
    %cst_2 = arith.constant dense<0.000000e+00> : vector<8x8xf32>
    %6 = tpu.matmul %5, %0, %cst_2 {dimension_numbers = #tpu.dot_dimension_numbers<[1], [1], [0], [0], [0, 0, 1, 0], [], []>} : vector<8x32xf32>, vector<8x32xf32>, vector<8x8xf32> -> vector<8x8xf32>
    %7 = tpu.transpose %3, [1, 0] : vector<8x1xf32> -> vector<1x8xf32>
    %8 = vector.broadcast %3 : vector<8x1xf32> to vector<8x8xf32>
    %9 = vector.broadcast %7 : vector<1x8xf32> to vector<8x8xf32>
    %10 = arith.addf %8, %9 : vector<8x8xf32>
    %11 = arith.subf %10, %6 : vector<8x8xf32>
    %cst_3 = arith.constant 9.99999996E-13 : f32
    %12 = vector.broadcast %cst_3 : f32 to vector<8x8xf32>
    %13 = arith.maximumf %11, %12 : vector<8x8xf32>
    %14 = math.sqrt %13 : vector<8x8xf32>
    %c0_4 = arith.constant 0 : index
    %c0_5 = arith.constant 0 : index
    %15 = vector.load %arg2[%c0_4, %c0_5] : memref<8x1xi32, #tpu.memory_space<vmem>>, vector<8x1xi32>
    %c0_6 = arith.constant 0 : index
    %c0_7 = arith.constant 0 : index
    %16 = vector.load %arg3[%c0_6, %c0_7] : memref<1x8xi32, #tpu.memory_space<vmem>>, vector<1x8xi32>
    %17 = vector.broadcast %15 : vector<8x1xi32> to vector<8x8xi32>
    %18 = vector.broadcast %16 : vector<1x8xi32> to vector<8x8xi32>
    %19 = arith.cmpi eq, %17, %18 : vector<8x8xi32>
    %cst_8 = arith.constant 0.000000e+00 : f32
    %20 = vector.broadcast %cst_8 : f32 to vector<8x8xf32>
    %21 = arith.select %19, %14, %20 : vector<8x8xi1>, vector<8x8xf32>
    %cst_9 = arith.constant dense<0xFF800000> : vector<8xf32>
    %22 = vector.multi_reduction <maximumf>, %21, %cst_9 [1] : vector<8x8xf32> to vector<8xf32>
    %23 = vector.shape_cast %22 : vector<8xf32> to vector<8x1xf32>
    %24 = vector.broadcast %23 : vector<8x1xf32> to vector<8x8xf32>
    %25 = arith.subf %21, %24 : vector<8x8xf32>
    %26 = math.exp %25 : vector<8x8xf32>
    %cst_10 = arith.constant 0.000000e+00 : f32
    %27 = vector.broadcast %cst_10 : f32 to vector<8x8xf32>
    %28 = arith.select %19, %26, %27 : vector<8x8xi1>, vector<8x8xf32>
    %29 = arith.mulf %14, %28 : vector<8x8xf32>
    %cst_11 = arith.constant dense<0.000000e+00> : vector<8xf32>
    %30 = vector.multi_reduction <add>, %29, %cst_11 [1] : vector<8x8xf32> to vector<8xf32>
    %31 = vector.shape_cast %30 : vector<8xf32> to vector<8x1xf32>
    %cst_12 = arith.constant dense<0.000000e+00> : vector<8xf32>
    %32 = vector.multi_reduction <add>, %28, %cst_12 [1] : vector<8x8xf32> to vector<8xf32>
    %33 = vector.shape_cast %32 : vector<8xf32> to vector<8x1xf32>
    %cst_13 = arith.constant 9.99999997E-7 : f32
    %34 = vector.broadcast %cst_13 : f32 to vector<8x1xf32>
    %35 = arith.addf %33, %34 : vector<8x1xf32>
    %36 = tpu.reciprocal %35 {approx = true} : vector<8x1xf32> -> vector<8x1xf32>
    %37 = arith.mulf %35, %36 : vector<8x1xf32>
    %cst_14 = arith.constant 2.000000e+00 : f32
    %38 = vector.broadcast %cst_14 : f32 to vector<8x1xf32>
    %39 = arith.subf %38, %37 : vector<8x1xf32>
    %40 = arith.mulf %36, %39 : vector<8x1xf32>
    %41 = arith.mulf %31, %40 : vector<8x1xf32>
    %cst_15 = arith.constant 0.000000e+00 : f32
    %42 = vector.broadcast %cst_15 : f32 to vector<8x8xf32>
    %43 = arith.subf %42, %14 : vector<8x8xf32>
    %44 = math.exp %43 : vector<8x8xf32>
    %cst_16 = arith.constant 0.000000e+00 : f32
    %45 = vector.broadcast %cst_16 : f32 to vector<8x8xf32>
    %46 = arith.select %19, %45, %44 : vector<8x8xi1>, vector<8x8xf32>
    %47 = arith.mulf %14, %46 : vector<8x8xf32>
    %cst_17 = arith.constant dense<0.000000e+00> : vector<8xf32>
    %48 = vector.multi_reduction <add>, %47, %cst_17 [1] : vector<8x8xf32> to vector<8xf32>
    %49 = vector.shape_cast %48 : vector<8xf32> to vector<8x1xf32>
    %cst_18 = arith.constant dense<0.000000e+00> : vector<8xf32>
    %50 = vector.multi_reduction <add>, %46, %cst_18 [1] : vector<8x8xf32> to vector<8xf32>
    %51 = vector.shape_cast %50 : vector<8xf32> to vector<8x1xf32>
    %cst_19 = arith.constant 9.99999997E-7 : f32
    %52 = vector.broadcast %cst_19 : f32 to vector<8x1xf32>
    %53 = arith.addf %51, %52 : vector<8x1xf32>
    %54 = tpu.reciprocal %53 {approx = true} : vector<8x1xf32> -> vector<8x1xf32>
    %55 = arith.mulf %53, %54 : vector<8x1xf32>
    %cst_20 = arith.constant 2.000000e+00 : f32
    %56 = vector.broadcast %cst_20 : f32 to vector<8x1xf32>
    %57 = arith.subf %56, %55 : vector<8x1xf32>
    %58 = arith.mulf %54, %57 : vector<8x1xf32>
    %59 = arith.mulf %49, %58 : vector<8x1xf32>
    %60 = arith.subf %59, %41 : vector<8x1xf32>
    %cst_21 = arith.constant 0.000000e+00 : f32
    %61 = vector.broadcast %cst_21 : f32 to vector<8x1xf32>
    %62 = arith.subf %61, %60 : vector<8x1xf32>
    %cst_22 = arith.constant 0.000000e+00 : f32
    %63 = vector.broadcast %cst_22 : f32 to vector<8x1xf32>
    %64 = arith.maximumf %62, %63 : vector<8x1xf32>
    %65 = math.absf %60 : vector<8x1xf32>
    %cst_23 = arith.constant 0.000000e+00 : f32
    %66 = vector.broadcast %cst_23 : f32 to vector<8x1xf32>
    %67 = arith.subf %66, %65 : vector<8x1xf32>
    %68 = math.exp %67 : vector<8x1xf32>
    %cst_24 = arith.constant 1.000000e+00 : f32
    %69 = vector.broadcast %cst_24 : f32 to vector<8x1xf32>
    %70 = arith.addf %69, %68 : vector<8x1xf32>
    %71 = math.log %70 : vector<8x1xf32>
    %72 = arith.addf %64, %71 : vector<8x1xf32>
    %c0_25 = arith.constant 0 : index
    %c0_26 = arith.constant 0 : index
    %73 = vector.load %arg4[%c0_25, %c0_26] : memref<8x1xf32, #tpu.memory_space<vmem>>, vector<8x1xf32>
    tpu.vector_store %arg4[%c0_25, %c0_26], %72 {strides = array<i32>} : memref<8x1xf32, #tpu.memory_space<vmem>>, vector<8x1xf32>,
    %74 = arith.cmpf oge, %59, %41 : vector<8x1xf32>
    %75 = arith.extui %74 : vector<8x1xi1> to vector<8x1xi32>
    %c0_27 = arith.constant 0 : index
    %c0_28 = arith.constant 0 : index
    %76 = vector.load %arg5[%c0_27, %c0_28] : memref<8x1xi32, #tpu.memory_space<vmem>>, vector<8x1xi32>
    tpu.vector_store %arg5[%c0_27, %c0_28], %75 {strides = array<i32>} : memref<8x1xi32, #tpu.memory_space<vmem>>, vector<8x1xi32>,
    return
  }
  func.func @transform_0(%arg0: i32) -> (i32, i32) {
    %c0_i32 = arith.constant 0 : i32
    %c0_i32_0 = arith.constant 0 : i32
    %c0_i32_1 = arith.constant 0 : i32
    return %c0_i32, %c0_i32_0 : i32, i32
  }
  func.func @transform_1(%arg0: i32) -> (i32, i32) {
    %c0_i32 = arith.constant 0 : i32
    %c0_i32_0 = arith.constant 0 : i32
    return %arg0, %c0_i32 : i32, i32
  }
  func.func @transform_2(%arg0: i32) -> (i32, i32) {
    %c0_i32 = arith.constant 0 : i32
    %c0_i32_0 = arith.constant 0 : i32
    %c0_i32_1 = arith.constant 0 : i32
    return %c0_i32, %c0_i32_0 : i32, i32
  }
  func.func @transform_3(%arg0: i32) -> (i32, i32) {
    %c0_i32 = arith.constant 0 : i32
    %c0_i32_0 = arith.constant 0 : i32
    return %arg0, %c0_i32 : i32, i32
  }
  func.func @transform_4(%arg0: i32) -> (i32, i32) {
    %c0_i32 = arith.constant 0 : i32
    %c0_i32_0 = arith.constant 0 : i32
    return %arg0, %c0_i32 : i32, i32
  }
}

</mosaic_0001>

<bundles_post_ra>
// kernel: tpu_custom_call.1
= control target key start
LH: loop header
LB: loop body
LE: loop exit
PB: predicated region body
PF: predicated region fallthrough
CT: control target
= control target key end

     0   :  { %vm18_vm0 = vcmask 261120   ;;  %v246_v1 = vmov 0.0   ;;  %vm247_vm1 = vmmov 0   ;;  %v248_v5 = vmov 0   ;;  %s301_s0 = inlined_call_operand.vmem [shape: f32[8,32], index: 0, kind: input, shape index: {}]   ;;  %s302_s1 = inlined_call_operand.vmem [shape: s32[8,1], index: 1, kind: input, shape index: {}]   ;;  %s303_s2 = inlined_call_operand.vmem [shape: s32[1,8], index: 2, kind: input, shape index: {}]   ;;  %s304_s4 = inlined_call_operand.vmem [shape: s32[8,1], index: 4, kind: output, shape index: {1}]   ;;  %s305_s3 = inlined_call_operand.vmem [shape: f32[8,1], index: 3, kind: output, shape index: {0}]  }
   0x1   :  { %v16_v0 = vld [vmem:[%s301_s0] sm:$0xff]  ;;  %223 = vmatprep.subr.mxu0 %v246_v1  ;;  %225 = vmatprep.mubr.msk.f32.mxu0 %vm247_vm1, %v246_v1  ;;  %v131_v10 = vlaneseq  ;;  %vm156_vm5 = vcmask 64512   ;;  %vm205_vm6 = vcmask 7168  }
   0x2   :  { %v17_v2 = vmul.f32 %v16_v0, %v16_v0  ;;  %v22_v3 = vmul.f32 2.0, %v16_v0  ;;  %224 = vmatpush3.xpose.msk.msra.mxu0 %vm18_vm0, %v16_v0  ;;  %231 = vset.pattern.permute.xlu0 %v248_v5  ;;  %v145_v6 = vld [vmem:[%s302_s1] sm:$0xff] }
   0x3   :  { %v132_v11 = vshrl.u32 %v131_v10, 7  ;;  %v220_v18 = vld [vmem:[%s303_s2] ss:$0 sm:$0xff] }
   0x4   :  { %v19_v4 = vsel %vm18_vm0, %v17_v2, 0.0 }
   0x5   :  { %20 = vadd.xlane.f32.xlu0 %v19_v4  ;;  %226 = vmatmul.mubr.msk.f32.vlgmr.msra.gmra.mxu0 %vm18_vm0, %v22_v3  ;;  %v133_v12 = vsub.s32 0, %v132_v11 }
  0x1b   :  { %148 = vperm.xlu0 %231, %v145_v6  }
  0x8e   :  { %v21_v7 = vpop.xlane.xlu0 %20 }
  0x8f   :  { %99 = vxpose.xlu1.b32.start.end [1/1] (short) (narrow) %v21_v7, 8 }
  0x96   :  { %v149_v19 = vpop.permute.xlu0 %148 }
  0x97   :  { %vm154_vm2 = vcmp.eq.s32.totalorder %v149_v19, %v220_v18 }
  0xc5   :  { %v95_v8 = vpop.f32.mrf.mxu0 }
  0xc7   :  { %v227_v9 = vpop.f32.mrf.mxu0 }
 0x10b   :  { %v115_v13 = vpop.trf.xlu1 }
 0x10c   :  { %v134_v14 = vrot.slane %v115_v13, %v133_v12 }
 0x10e   :  { %v135_v15 = vadd.f32 %v134_v14, %v21_v7 }
 0x110   :  { %v136_v16 = vsub.f32 %v135_v15, %v95_v8 }
 0x112   :  { %v137_v17 = vmax.f32 %v136_v16, 1e-12 }
 0x114   :  { %232 = vrsqrt.f32 %v137_v17  ;;  %vm140_vm3 = vcmp.eq.f32.partialorder %v137_v17, inf  ;;  %v143_v22 = vand.u32 2147483648, %v137_v17  ;;  %vm142_vm4 = vcmp.eq.f32.partialorder %v137_v17, 0.0 }
 0x121   :  { %v233_v20 = vpop.eup %232 }
 0x122   :  { %v139_v21 = vmul.f32 %v233_v20, %v137_v17 }
 0x124   :  { %v141_v23 = vsel %vm140_vm3, %v137_v17, %v139_v21 }
 0x125   :  { %v144_v24 = vsel %vm142_vm4, %v143_v22, %v141_v23 }
 0x126   :  { %v155_v25 = vsel %vm154_vm2, %v144_v24, 0.0  ;;  %v177_v27 = vsub.f32 0.0, %v144_v24 }
 0x127   :  { %v157_v26 = vsel %vm156_vm5, %v155_v25, -inf }
 0x128   :  { %158 = vmax.xlane.f32.xlu1 %v157_v26  ;;  %v178_v28 = vmul.f32 1.442695, %v177_v27 }
 0x12a   :  { %234 = vpow2.f32 %v178_v28 }
 0x137   :  { %v235_v32 = vpop.eup %234 }
 0x138   :  { %v180_v37 = vsel %vm154_vm2, 0.0, %v235_v32 }
 0x139   :  { %v185_v39 = vsel %vm156_vm5, %v180_v37, 0.0  ;;  %v181_v40 = vmul.f32 %v180_v37, %v144_v24 }
 0x13b   :  { %v182_v41 = vsel %vm156_vm5, %v181_v40, 0.0 }
 0x1b1   :  { %v159_v29 = vpop.xlane.xlu1 %158 }
 0x1b2   :  { %v160_v30 = vsub.f32 %v155_v25, %v159_v29 }
 0x1b4   :  { %v161_v31 = vmul.f32 1.442695, %v160_v30 }
 0x1b6   :  { %236 = vpow2.f32 %v161_v31 }
 0x1c3   :  { %v237_v33 = vpop.eup %236 }
 0x1c4   :  { %v163_v34 = vsel %vm154_vm2, %v237_v33, 0.0 }
 0x1c5   :  { %v168_v35 = vsel %vm156_vm5, %v163_v34, 0.0  ;;  %v164_v36 = vmul.f32 %v163_v34, %v144_v24 }
 0x1c6   :  { %169 = vadd.xlane.f32.xlu1 %v168_v35 }
 0x1c7   :  { %v165_v38 = vsel %vm156_vm5, %v164_v36, 0.0 }
 0x1c8   :  { %166 = vadd.xlane.f32.xlu0 %v165_v38 }
 0x1ca   :  { %186 = vadd.xlane.f32.xlu1 %v185_v39 }
 0x1ce   :  { %183 = vadd.xlane.f32.xlu1 %v182_v41 }
 0x24f   :  { %v170_v42 = vpop.xlane.xlu1 %169 }
 0x250   :  { %v171_v43 = vadd.f32 1e-06, %v170_v42 }
 0x251   :  { %v167_v54 = vpop.xlane.xlu0 %166 }
 0x252   :  { %238 = vrcp.f32 %v171_v43 }
 0x253   :  { %v187_v44 = vpop.xlane.xlu1 %186 }
 0x254   :  { %v188_v45 = vadd.f32 1e-06, %v187_v44 }
 0x256   :  { %240 = vrcp.f32 %v188_v45 }
 0x257   :  { %v184_v55 = vpop.xlane.xlu1 %183 }
 0x25f   :  { %v239_v46 = vpop.eup %238 }
 0x260   :  { %v173_v47 = vmul.f32 %v239_v46, %v171_v43 }
 0x262   :  { %v174_v48 = vsub.f32 2.0, %v173_v47 }
 0x263   :  { %v241_v49 = vpop.eup %240 }
 0x264   :  { %v190_v50 = vmul.f32 %v241_v49, %v188_v45  ;;  %v175_v51 = vmul.f32 %v239_v46, %v174_v48 }
 0x266   :  { %v191_v52 = vsub.f32 2.0, %v190_v50  ;;  %v176_v56 = vmul.f32 %v175_v51, %v167_v54 }
 0x268   :  { %v192_v53 = vmul.f32 %v241_v49, %v191_v52 }
 0x26a   :  { %v193_v57 = vmul.f32 %v192_v53, %v184_v55 }
 0x26c   :  { %v194_v58 = vsub.f32 %v193_v57, %v176_v56  ;;  %vm207_vm7 = vcmp.ge.f32.partialorder %v193_v57, %v176_v56 }
 0x26d   :  { %v208_v59 = vsel %vm207_vm7, 1, %v248_v5 }
 0x26e   :  { %v197_v60 = vand.u32 2147483647, %v194_v58  ;;  %209 = vst.msk [vmem:[%s304_s4] sm:$0xff] %vm205_vm6, %v208_v59  ;;  %v195_v1 = vsub.f32 0.0, %v194_v58 }
 0x270   :  { %v198_v61 = vsub.f32 0.0, %v197_v60  ;;  %v196_v3 = vmax.f32 %v195_v1, 0.0 }
 0x272   :  { %v199_v62 = vmul.f32 1.442695, %v198_v61 }
 0x274   :  { %242 = vpow2.f32 %v199_v62 }
 0x281   :  { %v243_v63 = vpop.eup %242 }
 0x282   :  { %v201_v0 = vadd.f32 1.0, %v243_v63 }
 0x284   :  { %244 = vlog2.f32 %v201_v0 }
 0x291   :  { %v245_v2 = vpop.eup %244 }
 0x292   :  { %v203_v4 = vmul.f32 0.6931472, %v245_v2 }
 0x294   :  { %v204_v6 = vadd.f32 %v203_v4, %v196_v3 }
 0x296   :  { %206 = vst.msk [vmem:[%s305_s3] sm:$0xff] %vm205_vm6, %v204_v6 }

</bundles_post_ra>
